<compile_context>
chip_gen: v7x
topology: tpu7x:2x2x1
jax: 0.10.0
libtpu: 0.0.40
codegen_flags: <defaults>
</compile_context>

<pallas_src>
import math
import functools

import jax
import jax.numpy as jnp
from jax import lax
from jax.experimental import pallas as pl
from jax.experimental.pallas import tpu as pltpu


def _attention_pool_kernel(x_ref, seg_ref, expm_ref, wqkv_ref, wout_ref,
                           cvec_ref, o_ref, *, num_heads, t0, bb, mx_dtype):
    """Single-query (token-0) attention pool over one batch block.

    Layouts (channels on sublanes, batch/token lane-packed):
      x_ref:    [C, bb*t0]   spatial tokens, spatial pos-emb already added
      seg_ref:  [bb*t0, bb]  lane -> batch 0/1 indicator (precomputed)
      expm_ref: [bb, bb*t0]  batch -> lane 0/1 indicator (precomputed)
      wqkv_ref: [3C, C]      fused q/k/v projection weight
      wout_ref: [Dout, C]    output projection weight
      cvec_ref: [4C+Dout, 1] pos0_adj | bqkv | bout (packed constants)
      o_ref:    [Dout, bb]   token-0 output, batch on lanes
    """
    f32 = jnp.float32
    mx = mx_dtype
    C = wqkv_ref.shape[1]
    three_c = wqkv_ref.shape[0]
    H = num_heads
    ch = C // H
    L = bb * t0

    xsp = x_ref[...]                                    # [C, L]   (dtype mx)
    seg = seg_ref[...]                                  # [L, bb]  (dtype mx)
    expm = expm_ref[...]                                # [bb, L]  (dtype mx)
    wqkv = wqkv_ref[...]                                # [3C, C]
    cvec = cvec_ref[...]                                # [4C+Dout, 1]
    pos0 = cvec[:C]                                     # [C, 1]
    bqkv = cvec[C:C + three_c]                          # [3C, 1]
    bout = cvec[C + three_c:]                           # [Dout, 1]

    # Tiny head-selector indicators (H*C elements -- negligible VPU work).
    scol = lax.broadcasted_iota(jnp.int32, (H, C), 1)
    soff = lax.broadcasted_iota(jnp.int32, (H, C), 0) * ch
    sel = ((scol >= soff) & (scol < soff + ch)).astype(f32)      # [H, C]
    grow = lax.broadcasted_iota(jnp.int32, (C, H), 0)
    goff = lax.broadcasted_iota(jnp.int32, (C, H), 1) * ch
    selT = ((grow >= goff) & (grow < goff + ch)).astype(f32)     # [C, H]

    # ---- mean token (token 0) per batch element -------------------------------
    mean = jnp.dot(xsp, seg, preferred_element_type=f32) * (1.0 / t0)   # [C, bb]
    x0 = mean + pos0                                                    # [C, bb]

    # ---- projections: fused q/k/v for token 0, k/v only for spatial tokens ----
    inv_sqrt_ch = 1.0 / math.sqrt(ch)           # scale**2 folded into q
    qkv0 = jnp.dot(wqkv, x0, preferred_element_type=f32) + bqkv         # [3C, bb]
    q0 = qkv0[:C] * inv_sqrt_ch                                         # [C, bb]
    k0 = qkv0[C:2 * C]                                                  # [C, bb]
    v0 = qkv0[2 * C:]                                                   # [C, bb]
    kvsp = (jnp.dot(wqkv[C:].astype(mx), xsp, preferred_element_type=f32)
            + bqkv[C:])                                                 # [2C, L]
    ksp = kvsp[:C]
    vsp = kvsp[C:]

    # ---- single-query scores, all heads & batch elements at once --------------
    s0 = jnp.dot(sel, q0 * k0, preferred_element_type=f32)              # [H, bb]
    qexp = jnp.dot(q0.astype(mx), expm, preferred_element_type=f32)     # [C, L]
    ssp = jnp.dot(sel.astype(mx), (qexp * ksp).astype(mx),
                  preferred_element_type=f32)                           # [H, L]

    # ---- softmax over the 1 + t0 keys of each (head, batch) group -------------
    # Only the running max uses the lane-splitting reshape; segment sum and
    # the broadcasts back to lanes go through the MXU (dots with seg / expm).
    m_sp = jnp.max(ssp.reshape(H, bb, t0), axis=-1)                     # [H, bb]
    m = jnp.maximum(m_sp, s0).astype(mx)                                # [H, bb]
    e0 = jnp.exp(s0 - m.astype(f32))                                    # [H, bb]
    mexp = jnp.dot(m, expm, preferred_element_type=f32)                 # [H, L]
    e3 = jnp.exp(ssp - mexp)                                            # [H, L]
    denom = e0 + jnp.dot(e3.astype(mx), seg, preferred_element_type=f32)  # [H, bb]
    inv = pl.reciprocal(denom, approx=True).astype(mx)                  # [H, bb]
    w0 = e0 * inv.astype(f32)                                           # [H, bb]
    invexp = jnp.dot(inv, expm, preferred_element_type=f32)             # [H, L]
    wsp = e3 * invexp                                                   # [H, L]

    # ---- weighted value sum (token-0 output only) ------------------------------
    w0c = jnp.dot(selT, w0, preferred_element_type=f32)                 # [C, bb]
    wspc = jnp.dot(selT.astype(mx), wsp.astype(mx),
                   preferred_element_type=f32)                          # [C, L]
    a = w0c * v0 + jnp.dot((wspc * vsp).astype(mx), seg,
                           preferred_element_type=f32)                  # [C, bb]

    # ---- output projection, lane-dense store -----------------------------------
    o_ref[...] = (jnp.dot(wout_ref[...], a, preferred_element_type=f32)
                  + bout).astype(o_ref.dtype)                           # [Dout, bb]


def _const_block_spec(shape):
    """Constant-index block (fetched once); single-buffered when supported."""
    index_map = lambda i: (0,) * len(shape)
    try:
        return pl.BlockSpec(shape, index_map, pipeline_mode=pl.Buffered(1))
    except Exception:
        return pl.BlockSpec(shape, index_map)


def attention_pool_2d(x, pos, wqkv, bqkv, wout, bout, num_heads, *,
                      use_bf16=False):
    """AttentionPool2d forward: x [B, C, H, W] -> [B, Dout] (token 0 only)."""
    B, C, Hs, Ws = x.shape
    T0 = Hs * Ws
    Dout = wout.shape[0]
    assert C % num_heads == 0
    f32 = jnp.float32
    mx = jnp.bfloat16 if use_bf16 else f32

    # ---- per-generation VMEM budget (fallback: v7x per-core 64 MiB) ------------
    try:
        vmem_cap = int(pltpu.get_tpu_info().vmem_capacity_bytes)
    except Exception:
        vmem_cap = 64 << 20

    # ---- batch blocking ---------------------------------------------------------
    # Large B: 128-wide batch blocks on big-VMEM chips (v5e/v6e, 128 MiB),
    # 64-wide on v7x-class (64 MiB).  Small/medium B: one block, unless a
    # 2-way split keeps the lane axis 128-aligned (lets both v7x TensorCores
    # work on the "parallel" grid axis).
    if B > 128:
        bb_pref = 128 if vmem_cap >= (100 << 20) else 64
        BB = bb_pref if (bb_pref * T0) % 128 == 0 else 128
    else:
        half = -(-B // 2)
        BB = half if (B >= 2 and (half * T0) % 128 == 0) else B
    B_pad = -(-B // BB) * BB
    nb = B_pad // BB
    L = BB * T0

    # ---- fold spatial pos-emb into x; mean-correct the token-0 pos-emb ---------
    pos_sp = pos[:, 1:]                                               # [C, T0]
    pos0_adj = pos[:, :1] - jnp.mean(pos_sp, axis=1, keepdims=True)   # [C, 1]
    x3 = x.reshape(B, C, T0) + pos_sp[None]
    if B_pad != B:
        x3 = jnp.pad(x3, ((0, B_pad - B), (0, 0), (0, 0)))
    # Lane-pack the batch: [C, B_pad*T0], batch b on lanes [b*T0, (b+1)*T0).
    x2 = jnp.transpose(x3, (1, 0, 2)).reshape(C, B_pad * T0).astype(mx)

    # ---- per-block indicator matrices, built ONCE in the wrapper ---------------
    lane_b = jnp.arange(L, dtype=jnp.int32) // T0
    bidx = jnp.arange(BB, dtype=jnp.int32)
    seg = (lane_b[:, None] == bidx[None, :]).astype(mx)               # [L, BB]
    expm = (bidx[:, None] == lane_b[None, :]).astype(mx)              # [BB, L]

    # ---- tiny [*, 1] operands packed into a single input stream ----------------
    cvec = jnp.concatenate([pos0_adj, bqkv, bout], axis=0).astype(f32)  # [4C+Dout, 1]

    kernel = functools.partial(_attention_pool_kernel, num_heads=num_heads,
                               t0=T0, bb=BB, mx_dtype=mx)

    # ---- explicit VMEM budget + advisory cost estimate -------------------------
    esz = 2 if use_bf16 else 4
    vmem_est = (2 * C * L * esz                  # x block (double-buffered)
                + 2 * 2 * L * BB * esz           # seg + expm
                + 10 * C * L * 4                 # f32 [C, L] temporaries
                + 8 * num_heads * L * 4          # f32 [H, L] temporaries
                + (3 * C * C + Dout * C + 4 * C + Dout) * 8
                + 2 * Dout * BB * 4)             # output block
    vmem_limit = int(min(max(vmem_est + (8 << 20), 32 << 20),
                         int(0.9 * vmem_cap)))
    macs = nb * (2 * C * L * BB + 2 * C * C * L + 3 * C * C * BB
                 + C * BB * L + num_heads * C * L + 3 * num_heads * BB * L
                 + C * num_heads * L + Dout * C * BB)
    cost = pl.CostEstimate(
        flops=2 * macs,
        transcendentals=nb * num_heads * (L + BB),
        bytes_accessed=int(x2.size * x2.dtype.itemsize
                           + 2 * seg.size * seg.dtype.itemsize
                           + (wqkv.size + wout.size + cvec.size) * 4
                           + nb * Dout * BB * 4))

    out = pl.pallas_call(
        kernel,
        out_shape=jax.ShapeDtypeStruct((nb, Dout, BB), f32),
        grid=(nb,),
        in_specs=[
            pl.BlockSpec((C, L), lambda i: (0, i)),     # x (batch-blocked lanes)
            _const_block_spec((L, BB)),                 # seg  (fetched once)
            _const_block_spec((BB, L)),                 # expm (fetched once)
            _const_block_spec((3 * C, C)),              # fused qkv weight
            _const_block_spec((Dout, C)),               # output weight
            _const_block_spec((4 * C + Dout, 1)),       # pos0_adj | bqkv | bout
        ],
        out_specs=pl.BlockSpec((None, Dout, BB), lambda i: (i, 0, 0)),
        compiler_params=pltpu.CompilerParams(
            dimension_semantics=("parallel",),
            vmem_limit_bytes=vmem_limit),
        cost_estimate=cost,
    )(x2, seg, expm, wqkv.astype(f32), wout.astype(f32), cvec)

    # [nb, Dout, BB] -> [B, Dout]
    return jnp.transpose(out, (0, 2, 1)).reshape(B_pad, Dout)[:B]


def reference(x, pos, wqkv, bqkv, wout, bout, num_heads):
    """Pure-JAX transcription of the PyTorch forward, for correctness check."""
    hp = jax.lax.Precision.HIGHEST
    B, C, H, W = x.shape
    xr = x.reshape(B, C, -1)
    xr = jnp.concatenate([xr.mean(axis=-1, keepdims=True), xr], axis=-1)
    xr = xr + pos[None]
    qkv = jnp.einsum('oc,bct->bot', wqkv, xr, precision=hp) + bqkv[None]
    T = xr.shape[-1]
    ch = C // num_heads
    q, k, v = jnp.split(qkv, 3, axis=1)
    q = q.reshape(B * num_heads, ch, T)
    k = k.reshape(B * num_heads, ch, T)
    v = v.reshape(B * num_heads, ch, T)
    scale = 1.0 / math.sqrt(math.sqrt(ch))
    w = jnp.einsum('bct,bcs->bts', q * scale, k * scale, precision=hp)
    w = jax.nn.softmax(w, axis=-1)
    a = jnp.einsum('bts,bcs->bct', w, v, precision=hp).reshape(B, C, T)
    out = jnp.einsum('oc,bct->bot', wout, a, precision=hp) + bout[None]
    return out[:, :, 0]


if __name__ == "__main__":
    B = 2
    spacial_dim = 8
    embed_dim = 32
    num_head_channels = 8
    output_dim = 16
    num_heads = embed_dim // num_head_channels
    T = spacial_dim ** 2 + 1

    key = jax.random.PRNGKey(0)
    kx, kpos, kwq, kbq, kwo, kbo = jax.random.split(key, 6)

    x = jax.random.normal(kx, (B, embed_dim, spacial_dim, spacial_dim), jnp.float32)
    # positional_embedding = randn(embed_dim, spacial_dim**2 + 1) / embed_dim**0.5
    pos = jax.random.normal(kpos, (embed_dim, T), jnp.float32) / embed_dim ** 0.5
    # conv_nd(1, ..., kernel=1) weights, squeezed to 2-D matmul form
    wqkv = jax.random.normal(kwq, (3 * embed_dim, embed_dim), jnp.float32) / math.sqrt(embed_dim)
    bqkv = jax.random.normal(kbq, (3 * embed_dim, 1), jnp.float32) * 0.01
    wout = jax.random.normal(kwo, (output_dim, embed_dim), jnp.float32) / math.sqrt(embed_dim)
    bout = jax.random.normal(kbo, (output_dim, 1), jnp.float32) * 0.01

    ref = reference(x, pos, wqkv, bqkv, wout, bout, num_heads)

    # f32 MXU path (default): strict tolerance (absorbs MXU reassociation +
    # approx reciprocal).
    out = attention_pool_2d(x, pos, wqkv, bqkv, wout, bout, num_heads)
    out = jax.block_until_ready(out)
    assert out.shape == (B, output_dim), out.shape
    assert jnp.allclose(out, ref, rtol=2e-3, atol=2e-3), \
        float(jnp.max(jnp.abs(out - ref)))

    # bf16 MXU-operand path (v6e/v7x perf recommendation): single-pass MXU and
    # half-size seg/expm/x tiles; bf16 operand rounding needs a looser bound.
    out_bf16 = attention_pool_2d(x, pos, wqkv, bqkv, wout, bout, num_heads,
                                 use_bf16=True)
    out_bf16 = jax.block_until_ready(out_bf16)
    assert jnp.allclose(out_bf16, ref, rtol=2e-2, atol=2e-2), \
        float(jnp.max(jnp.abs(out_bf16 - ref)))

    print("KERNEL_OK")
</pallas_src>

<mosaic_0001>
module attributes {stable_mosaic.version = 11 : i64} {
  func.func @_attention_pool_kernel(%arg0: i32, %arg1: memref<32x128xf32, #tpu.memory_space<vmem>>, %arg2: memref<128x2xf32, #tpu.memory_space<vmem>>, %arg3: memref<2x128xf32, #tpu.memory_space<vmem>>, %arg4: memref<96x32xf32, #tpu.memory_space<vmem>>, %arg5: memref<16x32xf32, #tpu.memory_space<vmem>>, %arg6: memref<144x1xf32, #tpu.memory_space<vmem>>, %arg7: memref<1x16x2xf32, #tpu.memory_space<vmem>>) attributes {dimension_semantics = [#tpu.dimension_semantics<parallel>], iteration_bounds = array<i64: 1>, scalar_prefetch = 0 : i64, scratch_operands = 0 : i64, tpu.core_type = #tpu.core_type<tc>, window_params = [{transform_indices = @transform_0, window_bounds = array<i64: 32, 128>}, {pipeline_mode = #tpu.pipeline_mode<synchronous>, transform_indices = @transform_1, window_bounds = array<i64: 128, 2>}, {pipeline_mode = #tpu.pipeline_mode<synchronous>, transform_indices = @transform_2, window_bounds = array<i64: 2, 128>}, {pipeline_mode = #tpu.pipeline_mode<synchronous>, transform_indices = @transform_3, window_bounds = array<i64: 96, 32>}, {pipeline_mode = #tpu.pipeline_mode<synchronous>, transform_indices = @transform_4, window_bounds = array<i64: 16, 32>}, {pipeline_mode = #tpu.pipeline_mode<synchronous>, transform_indices = @transform_5, window_bounds = array<i64: 144, 1>}, {transform_indices = @transform_6, window_bounds = array<i64: 1, 16, 2>}]} {
    %c0 = arith.constant 0 : index
    %c0_0 = arith.constant 0 : index
    %0 = vector.load %arg1[%c0, %c0_0] : memref<32x128xf32, #tpu.memory_space<vmem>>, vector<32x128xf32>
    %c0_1 = arith.constant 0 : index
    %c0_2 = arith.constant 0 : index
    %1 = vector.load %arg2[%c0_1, %c0_2] : memref<128x2xf32, #tpu.memory_space<vmem>>, vector<128x2xf32>
    %c0_3 = arith.constant 0 : index
    %c0_4 = arith.constant 0 : index
    %2 = vector.load %arg3[%c0_3, %c0_4] : memref<2x128xf32, #tpu.memory_space<vmem>>, vector<2x128xf32>
    %c0_5 = arith.constant 0 : index
    %c0_6 = arith.constant 0 : index
    %3 = vector.load %arg4[%c0_5, %c0_6] : memref<96x32xf32, #tpu.memory_space<vmem>>, vector<96x32xf32>
    %c0_7 = arith.constant 0 : index
    %c0_8 = arith.constant 0 : index
    %4 = vector.load %arg6[%c0_7, %c0_8] : memref<144x1xf32, #tpu.memory_space<vmem>>, vector<144x1xf32>
    %5 = vector.extract_strided_slice %4 {offsets = [0, 0], sizes = [32, 1], strides = [1, 1]} : vector<144x1xf32> to vector<32x1xf32>
    %6 = vector.extract_strided_slice %4 {offsets = [32, 0], sizes = [96, 1], strides = [1, 1]} : vector<144x1xf32> to vector<96x1xf32>
    %7 = vector.extract_strided_slice %4 {offsets = [128, 0], sizes = [16, 1], strides = [1, 1]} : vector<144x1xf32> to vector<16x1xf32>
    %8 = tpu.iota {dimensions = array<i32: 1>} : vector<4x32xi32>
    %9 = tpu.iota {dimensions = array<i32: 0>} : vector<4x32xi32>
    %c8_i32 = arith.constant 8 : i32
    %10 = vector.broadcast %c8_i32 : i32 to vector<4x32xi32>
    %11 = arith.muli %9, %10 : vector<4x32xi32>
    %12 = arith.cmpi sge, %8, %11 : vector<4x32xi32>
    %c8_i32_9 = arith.constant 8 : i32
    %13 = vector.broadcast %c8_i32_9 : i32 to vector<4x32xi32>
    %14 = arith.addi %11, %13 : vector<4x32xi32>
    %15 = arith.cmpi slt, %8, %14 : vector<4x32xi32>
    %16 = arith.andi %12, %15 : vector<4x32xi1>
    %17 = arith.extui %16 : vector<4x32xi1> to vector<4x32xi32>
    %18 = arith.sitofp %17 : vector<4x32xi32> to vector<4x32xf32>
    %19 = tpu.iota {dimensions = array<i32: 0>} : vector<32x4xi32>
    %20 = tpu.iota {dimensions = array<i32: 1>} : vector<32x4xi32>
    %c8_i32_10 = arith.constant 8 : i32
    %21 = vector.broadcast %c8_i32_10 : i32 to vector<32x4xi32>
    %22 = arith.muli %20, %21 : vector<32x4xi32>
    %23 = arith.cmpi sge, %19, %22 : vector<32x4xi32>
    %c8_i32_11 = arith.constant 8 : i32
    %24 = vector.broadcast %c8_i32_11 : i32 to vector<32x4xi32>
    %25 = arith.addi %22, %24 : vector<32x4xi32>
    %26 = arith.cmpi slt, %19, %25 : vector<32x4xi32>
    %27 = arith.andi %23, %26 : vector<32x4xi1>
    %28 = arith.extui %27 : vector<32x4xi1> to vector<32x4xi32>
    %29 = arith.sitofp %28 : vector<32x4xi32> to vector<32x4xf32>
    %cst = arith.constant dense<0.000000e+00> : vector<32x2xf32>
    %30 = tpu.matmul %0, %1, %cst {dimension_numbers = #tpu.dot_dimension_numbers<[1], [0], [0], [1], [0, 0, 1, 1], [], []>} : vector<32x128xf32>, vector<128x2xf32>, vector<32x2xf32> -> vector<32x2xf32>
    %cst_12 = arith.constant 1.562500e-02 : f32
    %31 = vector.broadcast %cst_12 : f32 to vector<32x2xf32>
    %32 = arith.mulf %30, %31 : vector<32x2xf32>
    %33 = vector.broadcast %5 : vector<32x1xf32> to vector<32x2xf32>
    %34 = arith.addf %32, %33 : vector<32x2xf32>
    %cst_13 = arith.constant dense<0.000000e+00> : vector<96x2xf32>
    %35 = tpu.matmul %3, %34, %cst_13 {dimension_numbers = #tpu.dot_dimension_numbers<[1], [0], [0], [1], [0, 0, 1, 1], [], []>} : vector<96x32xf32>, vector<32x2xf32>, vector<96x2xf32> -> vector<96x2xf32>
    %36 = vector.broadcast %6 : vector<96x1xf32> to vector<96x2xf32>
    %37 = arith.addf %35, %36 : vector<96x2xf32>
    %38 = vector.extract_strided_slice %37 {offsets = [0, 0], sizes = [32, 2], strides = [1, 1]} : vector<96x2xf32> to vector<32x2xf32>
    %cst_14 = arith.constant 0.353553385 : f32
    %39 = vector.broadcast %cst_14 : f32 to vector<32x2xf32>
    %40 = arith.mulf %38, %39 : vector<32x2xf32>
    %41 = vector.extract_strided_slice %37 {offsets = [32, 0], sizes = [32, 2], strides = [1, 1]} : vector<96x2xf32> to vector<32x2xf32>
    %42 = vector.extract_strided_slice %37 {offsets = [64, 0], sizes = [32, 2], strides = [1, 1]} : vector<96x2xf32> to vector<32x2xf32>
    %43 = vector.extract_strided_slice %3 {offsets = [32, 0], sizes = [64, 32], strides = [1, 1]} : vector<96x32xf32> to vector<64x32xf32>
    %cst_15 = arith.constant dense<0.000000e+00> : vector<64x128xf32>
    %44 = tpu.matmul %43, %0, %cst_15 {dimension_numbers = #tpu.dot_dimension_numbers<[1], [0], [0], [1], [0, 0, 1, 1], [], []>} : vector<64x32xf32>, vector<32x128xf32>, vector<64x128xf32> -> vector<64x128xf32>
    %45 = vector.extract_strided_slice %6 {offsets = [32, 0], sizes = [64, 1], strides = [1, 1]} : vector<96x1xf32> to vector<64x1xf32>
    %46 = vector.broadcast %45 : vector<64x1xf32> to vector<64x128xf32>
    %47 = arith.addf %44, %46 : vector<64x128xf32>
    %48 = vector.extract_strided_slice %47 {offsets = [0, 0], sizes = [32, 128], strides = [1, 1]} : vector<64x128xf32> to vector<32x128xf32>
    %49 = vector.extract_strided_slice %47 {offsets = [32, 0], sizes = [32, 128], strides = [1, 1]} : vector<64x128xf32> to vector<32x128xf32>
    %50 = arith.mulf %40, %41 : vector<32x2xf32>
    %cst_16 = arith.constant dense<0.000000e+00> : vector<4x2xf32>
    %51 = tpu.matmul %18, %50, %cst_16 {dimension_numbers = #tpu.dot_dimension_numbers<[1], [0], [0], [1], [0, 0, 1, 1], [], []>} : vector<4x32xf32>, vector<32x2xf32>, vector<4x2xf32> -> vector<4x2xf32>
    %cst_17 = arith.constant dense<0.000000e+00> : vector<32x128xf32>
    %52 = tpu.matmul %40, %2, %cst_17 {dimension_numbers = #tpu.dot_dimension_numbers<[1], [0], [0], [1], [0, 0, 1, 1], [], []>} : vector<32x2xf32>, vector<2x128xf32>, vector<32x128xf32> -> vector<32x128xf32>
    %53 = arith.mulf %52, %48 : vector<32x128xf32>
    %cst_18 = arith.constant dense<0.000000e+00> : vector<4x128xf32>
    %54 = tpu.matmul %18, %53, %cst_18 {dimension_numbers = #tpu.dot_dimension_numbers<[1], [0], [0], [1], [0, 0, 1, 1], [], []>} : vector<4x32xf32>, vector<32x128xf32>, vector<4x128xf32> -> vector<4x128xf32>
    %55 = vector.shape_cast %54 : vector<4x128xf32> to vector<4x2x64xf32>
    %cst_19 = arith.constant dense<0xFF800000> : vector<4x2xf32>
    %56 = vector.multi_reduction <maximumf>, %55, %cst_19 [2] : vector<4x2x64xf32> to vector<4x2xf32>
    %57 = arith.maximumf %56, %51 : vector<4x2xf32>
    %58 = arith.subf %51, %57 : vector<4x2xf32>
    %59 = math.exp %58 : vector<4x2xf32>
    %cst_20 = arith.constant dense<0.000000e+00> : vector<4x128xf32>
    %60 = tpu.matmul %57, %2, %cst_20 {dimension_numbers = #tpu.dot_dimension_numbers<[1], [0], [0], [1], [0, 0, 1, 1], [], []>} : vector<4x2xf32>, vector<2x128xf32>, vector<4x128xf32> -> vector<4x128xf32>
    %61 = arith.subf %54, %60 : vector<4x128xf32>
    %62 = math.exp %61 : vector<4x128xf32>
    %cst_21 = arith.constant dense<0.000000e+00> : vector<4x2xf32>
    %63 = tpu.matmul %62, %1, %cst_21 {dimension_numbers = #tpu.dot_dimension_numbers<[1], [0], [0], [1], [0, 0, 1, 1], [], []>} : vector<4x128xf32>, vector<128x2xf32>, vector<4x2xf32> -> vector<4x2xf32>
    %64 = arith.addf %59, %63 : vector<4x2xf32>
    %65 = tpu.reciprocal %64 {approx = true} : vector<4x2xf32> -> vector<4x2xf32>
    %66 = arith.mulf %59, %65 : vector<4x2xf32>
    %cst_22 = arith.constant dense<0.000000e+00> : vector<4x128xf32>
    %67 = tpu.matmul %65, %2, %cst_22 {dimension_numbers = #tpu.dot_dimension_numbers<[1], [0], [0], [1], [0, 0, 1, 1], [], []>} : vector<4x2xf32>, vector<2x128xf32>, vector<4x128xf32> -> vector<4x128xf32>
    %68 = arith.mulf %62, %67 : vector<4x128xf32>
    %cst_23 = arith.constant dense<0.000000e+00> : vector<32x2xf32>
    %69 = tpu.matmul %29, %66, %cst_23 {dimension_numbers = #tpu.dot_dimension_numbers<[1], [0], [0], [1], [0, 0, 1, 1], [], []>} : vector<32x4xf32>, vector<4x2xf32>, vector<32x2xf32> -> vector<32x2xf32>
    %cst_24 = arith.constant dense<0.000000e+00> : vector<32x128xf32>
    %70 = tpu.matmul %29, %68, %cst_24 {dimension_numbers = #tpu.dot_dimension_numbers<[1], [0], [0], [1], [0, 0, 1, 1], [], []>} : vector<32x4xf32>, vector<4x128xf32>, vector<32x128xf32> -> vector<32x128xf32>
    %71 = arith.mulf %69, %42 : vector<32x2xf32>
    %72 = arith.mulf %70, %49 : vector<32x128xf32>
    %cst_25 = arith.constant dense<0.000000e+00> : vector<32x2xf32>
    %73 = tpu.matmul %72, %1, %cst_25 {dimension_numbers = #tpu.dot_dimension_numbers<[1], [0], [0], [1], [0, 0, 1, 1], [], []>} : vector<32x128xf32>, vector<128x2xf32>, vector<32x2xf32> -> vector<32x2xf32>
    %74 = arith.addf %71, %73 : vector<32x2xf32>
    %c0_26 = arith.constant 0 : index
    %c0_27 = arith.constant 0 : index
    %75 = vector.load %arg5[%c0_26, %c0_27] : memref<16x32xf32, #tpu.memory_space<vmem>>, vector<16x32xf32>
    %cst_28 = arith.constant dense<0.000000e+00> : vector<16x2xf32>
    %76 = tpu.matmul %75, %74, %cst_28 {dimension_numbers = #tpu.dot_dimension_numbers<[1], [0], [0], [1], [0, 0, 1, 1], [], []>} : vector<16x32xf32>, vector<32x2xf32>, vector<16x2xf32> -> vector<16x2xf32>
    %77 = vector.broadcast %7 : vector<16x1xf32> to vector<16x2xf32>
    %78 = arith.addf %76, %77 : vector<16x2xf32>
    %c0_29 = arith.constant 0 : index
    %c0_30 = arith.constant 0 : index
    %c0_31 = arith.constant 0 : index
    %79 = vector.load %arg7[%c0_29, %c0_30, %c0_31] : memref<1x16x2xf32, #tpu.memory_space<vmem>>, vector<1x16x2xf32>
    %80 = vector.shape_cast %79 : vector<1x16x2xf32> to vector<16x2xf32>
    %81 = vector.shape_cast %78 : vector<16x2xf32> to vector<1x16x2xf32>
    tpu.vector_store %arg7[%c0_29, %c0_30, %c0_31], %81 {strides = array<i32>} : memref<1x16x2xf32, #tpu.memory_space<vmem>>, vector<1x16x2xf32>,
    return
  }
  func.func @transform_0(%arg0: i32) -> (i32, i32) {
    %c0_i32 = arith.constant 0 : i32
    %c0_i32_0 = arith.constant 0 : i32
    return %c0_i32, %arg0 : i32, i32
  }
  func.func @transform_1(%arg0: i32) -> (i32, i32) {
    %c0_i32 = arith.constant 0 : i32
    %c0_i32_0 = arith.constant 0 : i32
    %c0_i32_1 = arith.constant 0 : i32
    return %c0_i32, %c0_i32_0 : i32, i32
  }
  func.func @transform_2(%arg0: i32) -> (i32, i32) {
    %c0_i32 = arith.constant 0 : i32
    %c0_i32_0 = arith.constant 0 : i32
    %c0_i32_1 = arith.constant 0 : i32
    return %c0_i32, %c0_i32_0 : i32, i32
  }
  func.func @transform_3(%arg0: i32) -> (i32, i32) {
    %c0_i32 = arith.constant 0 : i32
    %c0_i32_0 = arith.constant 0 : i32
    %c0_i32_1 = arith.constant 0 : i32
    return %c0_i32, %c0_i32_0 : i32, i32
  }
  func.func @transform_4(%arg0: i32) -> (i32, i32) {
    %c0_i32 = arith.constant 0 : i32
    %c0_i32_0 = arith.constant 0 : i32
    %c0_i32_1 = arith.constant 0 : i32
    return %c0_i32, %c0_i32_0 : i32, i32
  }
  func.func @transform_5(%arg0: i32) -> (i32, i32) {
    %c0_i32 = arith.constant 0 : i32
    %c0_i32_0 = arith.constant 0 : i32
    %c0_i32_1 = arith.constant 0 : i32
    return %c0_i32, %c0_i32_0 : i32, i32
  }
  func.func @transform_6(%arg0: i32) -> (i32, i32, i32) {
    %c0_i32 = arith.constant 0 : i32
    %c0_i32_0 = arith.constant 0 : i32
    %c0_i32_1 = arith.constant 0 : i32
    return %arg0, %c0_i32, %c0_i32_0 : i32, i32, i32
  }
}

</mosaic_0001>

<bundles_post_ra>
// kernel: tpu_custom_call.1
= control target key start
LH: loop header
LB: loop body
LE: loop exit
PB: predicated region body
PF: predicated region fallthrough
CT: control target
= control target key end

     0   :  { %v2074_v3 = vmov 0   ;;  %vm283_vm0 = vcmask 261120   ;;  %vm644_vm1 = vcmask 1041408   ;;  %vm631_vm2 = vcmask 15360   ;;  %s2512_s1 = inlined_call_operand.vmem [shape: f32[128,2], index: 1, kind: input, shape index: {}]   ;;  %s2513_s0 = inlined_call_operand.vmem [shape: f32[32,128], index: 0, kind: input, shape index: {}]   ;;  %s2514_s5 = inlined_call_operand.vmem [shape: f32[144,1], index: 5, kind: input, shape index: {}]   ;;  %s2515_s3 = inlined_call_operand.vmem [shape: f32[96,32], index: 3, kind: input, shape index: {}]   ;;  %s2516_s2 = inlined_call_operand.vmem [shape: f32[2,128], index: 2, kind: input, shape index: {}]   ;;  %s2517_s4 = inlined_call_operand.vmem [shape: f32[16,32], index: 4, kind: input, shape index: {}]   ;;  %s2518_s6 = inlined_call_operand.vmem [shape: f32[1,16,2], index: 6, kind: output, shape index: {}]  }
   0x1   :  { %v27_v0 = vld [vmem:[%s2512_s1] sm:$0xff]  ;;  %v28_v1 = vld [vmem:[%s2512_s1 + $0x8] sm:$0xff]  ;;  %v29_v2 = vld [vmem:[%s2512_s1 + $0x10] sm:$0xff]  ;;  %2066 = vset.pattern.permute.xlu0 %v2074_v3  ;;  %2067 = vset.pattern.permute.xlu1 %v2074_v3  ;;  %vm2076_vm5 = vmmov 0   ;;  %vm843_vm7 = vcmask 517120   ;;  %vm925_vm8 = vcmask 1041409  }
   0x2   :  { %v2125_v4 = vpack.c.bf16 %v28_v1, %v27_v0  ;;  %v30_v5 = vld [vmem:[%s2512_s1 + $0x18] sm:$0xff]  ;;  %v31_v7 = vld [vmem:[%s2512_s1 + $0x20] sm:$0xff]  ;;  %v32_v8 = vld [vmem:[%s2512_s1 + $0x28] sm:$0xff]  ;;  %vm927_vm9 = vcmask 1042434   ;;  %vm929_vm10 = vcmask 1043459  }
   0x3   :  { %v2130_v6 = vpack.c.bf16 %v30_v5, %v29_v2  ;;  %v33_v9 = vld [vmem:[%s2512_s1 + $0x30] sm:$0xff]  ;;  %v2144_v10 = vpack.c.bf16 %v32_v8, %v31_v7  ;;  %v34_v11 = vld [vmem:[%s2512_s1 + $0x38] sm:$0xff]  ;;  %v23_v12 = vld [vmem:[%s2513_s0] sm:$0xff] }
   0x4   :  { %1936 = vmatprep.subr.bf16.mxu0 %v2125_v4  ;;  %v24_v13 = vld [vmem:[%s2513_s0 + $0x8] sm:$0xff]  ;;  %1743 = vmatprep.mubr.f32.mxu0 %v23_v12  ;;  %v25_v15 = vld [vmem:[%s2513_s0 + $0x10] sm:$0xff]  ;;  %v26_v16 = vld [vmem:[%s2513_s0 + $0x18] sm:$0xff]  ;;  %v2176_v21 = vpack.c.bf16 %v34_v11, %v33_v9 }
   0x5   :  { %1938 = vmatpush3.bf16.msra.mxu0 %v2125_v4  ;;  %v2155_v14 = vpack.c.bf16 %v24_v13, %v23_v12  ;;  %v56_v17 = vld [vmem:[%s2514_s5] sm:$0xff]  ;;  %v2166_v18 = vpack.c.bf16 %v26_v16, %v25_v15  ;;  %v58_v19 = vld [vmem:[%s2514_s5 + $0x10] sm:$0xff]  ;;  %v57_v20 = vld [vmem:[%s2514_s5 + $0x8] sm:$0xff] }
   0x6   :  { %1940 = vmatprep.subr.bf16.mxu0 %v2130_v6  ;;  %201 = vperm.xlu0 %2066, %v56_v17   ;;  %v59_v22 = vld [vmem:[%s2514_s5 + $0x18] sm:$0xff]  ;;  %v35_v23 = vld [vmem:[%s2512_s1 + $0x40] sm:$0xff]  ;;  %v36_v24 = vld [vmem:[%s2512_s1 + $0x48] sm:$0xff] }
   0x7   :  { %211 = vperm.xlu1 %2067, %v58_v19   ;;  %v60_v25 = vld [vmem:[%s2514_s5 + $0x20] sm:$0xff]  ;;  %v2192_v26 = vpack.c.bf16 %v36_v24, %v35_v23  ;;  %v61_v27 = vld [vmem:[%s2514_s5 + $0x28] sm:$0xff]  ;;  %v37_v28 = vld [vmem:[%s2512_s1 + $0x50] sm:$0xff] }
   0x8   :  { %v38_v29 = vld [vmem:[%s2512_s1 + $0x58] sm:$0xff]  ;;  %v62_v30 = vld [vmem:[%s2514_s5 + $0x30] sm:$0xff]  ;;  %v39_v33 = vld [vmem:[%s2512_s1 + $0x60] sm:$0xff] }
   0x9   :  { %1942 = vmatpush3.bf16.msra.mxu0 %v2130_v6  ;;  %v2208_v31 = vpack.c.bf16 %v38_v29, %v37_v28  ;;  %v63_v32 = vld [vmem:[%s2514_s5 + $0x38] sm:$0xff]  ;;  %v40_v34 = vld [vmem:[%s2512_s1 + $0x68] sm:$0xff]  ;;  %v64_v35 = vld [vmem:[%s2514_s5 + $0x40] sm:$0xff] }
   0xa   :  { %1944 = vmatprep.subr.bf16.mxu0 %v2144_v10  ;;  %206 = vperm.xlu0 %2066, %v57_v20   ;;  %v2224_v36 = vpack.c.bf16 %v40_v34, %v39_v33  ;;  %v65_v37 = vld [vmem:[%s2514_s5 + $0x48] sm:$0xff]  ;;  %v41_v38 = vld [vmem:[%s2512_s1 + $0x70] sm:$0xff]  ;;  %v42_v39 = vld [vmem:[%s2512_s1 + $0x78] sm:$0xff] }
   0xb   :  { %216 = vperm.xlu1 %2067, %v59_v22   ;;  %v66_v40 = vld [vmem:[%s2514_s5 + $0x50] sm:$0xff]  ;;  %v2240_v41 = vpack.c.bf16 %v42_v39, %v41_v38  ;;  %v67_v42 = vld [vmem:[%s2514_s5 + $0x58] sm:$0xff]  ;;  %v44_v43 = vld [vmem:[%s2515_s3] sm:$0xff] }
   0xc   :  { %1757 = vmatprep.mubr.msk.f32.mxu1 %vm283_vm0, %v44_v43  ;;  %v45_v62 = vld [vmem:[%s2515_s3 + $0x8] sm:$0xff]  ;;  %v46_v63 = vld [vmem:[%s2515_s3 + $0x10] sm:$0xff]  ;;  %v47_v0 = vld [vmem:[%s2515_s3 + $0x18] sm:$0xff] }
   0xd   :  { %1946 = vmatpush3.bf16.msra.mxu0 %v2144_v10  ;;  %v48_v1 = vld [vmem:[%s2515_s3 + $0x20] sm:$0xff]  ;;  %v49_v3 = vld [vmem:[%s2515_s3 + $0x28] sm:$0xff]  ;;  %v50_v5 = vld [vmem:[%s2515_s3 + $0x30] sm:$0xff] }
   0xe   :  { %1948 = vmatprep.subr.bf16.mxu0 %v2176_v21  ;;  %225 = vperm.xlu0 %2066, %v60_v25   ;;  %v2272_v2 = vld [vmem:[%s2516_s2] sm:$0x3]  ;;  %v51_v7 = vld [vmem:[%s2515_s3 + $0x38] sm:$0xff]  ;;  %v53_v9 = vld [vmem:[%s2515_s3 + $0x48] sm:$0xff] }
   0xf   :  { %230 = vperm.xlu1 %2067, %v61_v27   ;;  %v52_v8 = vld [vmem:[%s2515_s3 + $0x40] sm:$0xff]  ;;  %v54_v11 = vld [vmem:[%s2515_s3 + $0x50] sm:$0xff]  ;;  %v55_v12 = vld [vmem:[%s2515_s3 + $0x58] sm:$0xff]  ;;  %s2078_s3 = smov 64  }
  0x11   :  { %1950 = vmatpush3.bf16.msra.mxu0 %v2176_v21 }
  0x12   :  { %1952 = vmatprep.subr.bf16.mxu0 %v2192_v26  ;;  %235 = vperm.xlu0 %2066, %v62_v30  }
  0x13   :  { %240 = vperm.xlu1 %2067, %v63_v32  }
  0x15   :  { %1954 = vmatpush3.bf16.msra.mxu0 %v2192_v26 }
  0x16   :  { %1956 = vmatprep.subr.bf16.mxu0 %v2208_v31  ;;  %245 = vperm.xlu0 %2066, %v64_v35  }
  0x17   :  { %250 = vperm.xlu1 %2067, %v65_v37  }
  0x19   :  { %1958 = vmatpush3.bf16.msra.mxu0 %v2208_v31 }
  0x1a   :  { %1960 = vmatprep.subr.bf16.mxu0 %v2224_v36  ;;  %255 = vperm.xlu0 %2066, %v66_v40  }
  0x1b   :  { %260 = vperm.xlu1 %2067, %v67_v42  }
  0x1d   :  { %1962 = vmatpush3.bf16.msra.mxu0 %v2224_v36 }
  0x1e   :  { %1964 = vmatprep.subr.bf16.mxu0 %v2240_v41 }
  0x21   :  { %1966 = vmatpush3.bf16.msra.mxu0 %v2240_v41 }
  0x24   :  { %1744 = vmatmul.mubr.f32.vlgmr.msra.gmra.mrb[0].mxu0 %v24_v13  ;;  %v2075_v13 = vmov 0.0|0.0  }
  0x25   :  { %1746 = vmatprep.mubr.f32.mxu0 %v25_v15  ;;  %1983 = vmatprep.subr.bf16.mxu0 %v2075_v13 }
  0x28   :  { %1747 = vmatmul.mubr.f32.gmra.mrb[2].mxu0 %v26_v16 }
  0x85   :  { %v202_v44 = vpop.permute.xlu0 %201 }
  0x86   :  { %v212_v45 = vpop.permute.xlu1 %211 }
  0x89   :  { %v207_v49 = vpop.permute.xlu0 %206 }
  0x8a   :  { %v217_v56 = vpop.permute.xlu1 %216 }
  0x8d   :  { %v226_v15 = vpop.permute.xlu0 %225 }
  0xf7   :  { %v1745_v46 = vpop.f32.mrb[0].mxu0 }
  0xf8   :  { %v196_v47 = vmul.f32 0.015625, %v1745_v46  ;;  %v176_v48 = vpop.f32.mrb[1].mxu0 }
  0xf9   :  { %v195_v50 = vmul.f32 0.015625, %v176_v48 }
  0xfa   :  { %v220_v51 = vadd.f32 %v207_v49, %v196_v47 }
  0xfb   :  { %v219_v52 = vadd.f32 %v202_v44, %v195_v50  ;;  %v1748_v53 = vpop.f32.mrb[2].mxu0 }
  0xfc   :  { %v198_v54 = vmul.f32 0.015625, %v1748_v53  ;;  %v186_v55 = vpop.f32.mrb[3].mxu0 }
  0xfd   :  { %v197_v57 = vmul.f32 0.015625, %v186_v55  ;;  %v1967_v58 = vpack.c.bf16 %v220_v51, %v219_v52 }
  0xfe   :  { %v222_v59 = vadd.f32 %v217_v56, %v198_v54 }
  0xff   :  { %v221_v60 = vadd.f32 %v212_v45, %v197_v57  ;;  %1968 = vmatprep.subr.bf16.mxu1 %v1967_v58 }
 0x100   :  { %1970 = vmatpush3.bf16.msra.mxu1 %v1967_v58 }
 0x101   :  { %v1971_v61 = vpack.c.bf16 %v222_v59, %v221_v60 }
 0x103   :  { %1972 = vmatprep.subr.bf16.mxu1 %v1971_v61 }
 0x104   :  { %1974 = vmatpush3.bf16.msra.mxu1 %v1971_v61 }
 0x105   :  { %1976 = vmatprep.subr.bf16.mxu1 %v2155_v14 }
 0x107   :  { %1758 = vmatmul.mubr.msk.f32.vlgmr.msra.gmra.mrb[0].mxu1 %vm283_vm0, %v45_v62 }
 0x108   :  { %1760 = vmatprep.mubr.msk.f32.mxu1 %vm283_vm0, %v46_v63  ;;  %1978 = vmatpush3.bf16.msra.mxu1 %v2155_v14  ;;  %v231_v14 = vpop.permute.xlu1 %230 }
 0x109   :  { %1980 = vmatprep.subr.bf16.mxu1 %v2166_v18 }
 0x10b   :  { %1761 = vmatmul.mubr.msk.f32.gmra.mrb[2].mxu1 %vm283_vm0, %v47_v0 }
 0x10c   :  { %1763 = vmatprep.mubr.msk.f32.mxu1 %vm283_vm0, %v48_v1  ;;  %1982 = vmatpush3.bf16.msra.mxu1 %v2166_v18  ;;  %v241_v16 = vpop.permute.xlu1 %240  ;;  %v236_v18 = vpop.permute.xlu0 %235 }
 0x10d   :  { %1806 = vmatprep.subr.msk.mxu1 %vm644_vm1, %v2272_v2 }
 0x10f   :  { %1764 = vmatmul.mubr.msk.f32.gmra.mrb[4].mxu1 %vm283_vm0, %v49_v3 }
 0x110   :  { %1766 = vmatprep.mubr.msk.f32.mxu1 %vm283_vm0, %v50_v5  ;;  %v251_v29 = vpop.permute.xlu1 %250  ;;  %v246_v32 = vpop.permute.xlu0 %245 }
 0x113   :  { %1767 = vmatmul.mubr.msk.f32.gmra.mrb[6].mxu1 %vm283_vm0, %v51_v7 }
 0x114   :  { %1769 = vmatprep.mubr.msk.f32.mxu1 %vm283_vm0, %v52_v8  ;;  %v261_v42 = vpop.permute.xlu1 %260  ;;  %v256_v45 = vpop.permute.xlu0 %255 }
 0x117   :  { %1770 = vmatmul.mubr.msk.f32.gmra.mrb[8].mxu1 %vm283_vm0, %v53_v9 }
 0x118   :  { %1772 = vmatprep.mubr.msk.f32.mxu1 %vm283_vm0, %v54_v11 }
 0x11b   :  { %1773 = vmatmul.mubr.msk.f32.gmra.mrb[10].mxu1 %vm283_vm0, %v55_v12 }
 0x11c   :  { %1783 = vmatprep.mubr.msk.f32.mxu1 %vm283_vm0, %v48_v1  ;;  %v74_v1 = vlaneseq }
 0x11f   :  { %1784 = vmatmul.mubr.msk.f32.vlgmr.msra.gmra.mrb[12].mxu1 %vm283_vm0, %v49_v3  ;;  %v2340_v3 = vshrl.u32 %v74_v1, 7 }
 0x120   :  { %1786 = vmatprep.mubr.msk.f32.mxu1 %vm283_vm0, %v50_v5  ;;  %1807 = vmatpush3.msk.msra.mxu1 %vm644_vm1, %v2272_v2 }
 0x121   :  { %1989 = vmatprep.subr.bf16.mxu1 %v2075_v13  ;;  %v78_v5 = vmul.u32 8, %v2340_v3 }
 0x123   :  { %1787 = vmatmul.mubr.msk.f32.gmra.mrb[14].mxu1 %vm283_vm0, %v51_v7  ;;  %v2343_v7 = vand.u32 127, %v74_v1 }
 0x124   :  { %1789 = vmatprep.mubr.msk.f32.mxu1 %vm283_vm0, %v52_v8  ;;  %v80_v8 = vadd.s32 8, %v78_v5 }
 0x125   :  { %vm79_vm3 = vcmp.ge.s32.totalorder %v2343_v7, %v78_v5 }
 0x126   :  { %vm81_vm4 = vcmp.lt.s32.totalorder %v2343_v7, %v80_v8 }
 0x127   :  { %1790 = vmatmul.mubr.msk.f32.gmra.mrb[16].mxu1 %vm283_vm0, %v53_v9  ;;  %v2077_v9 = vmov 0.0   ;;  %vm82_vm6 = vmand %vm79_vm3, %vm81_vm4  ;;  %vm1157_vm4 = vcmask 31744  }
 0x128   :  { %1792 = vmatprep.mubr.msk.f32.mxu1 %vm283_vm0, %v54_v11  ;;  %1803 = vmatprep.mubr.msk.f32.mxu0 %vm2076_vm5, %v2077_v9  ;;  %v1543_v11 = vsel %vm82_vm6, 1.0, %v2077_v9  ;;  %vm1170_vm6 = vcmask 1043456  }
 0x12b   :  { %1793 = vmatmul.mubr.msk.f32.gmra.mrb[18].mxu1 %vm283_vm0, %v55_v12 }
 0x1da   :  { %v1759_v17 = vpop.f32.mrb[0].mxu1 }
 0x1db   :  { %v392_v19 = vadd.f32 %v1759_v17, %v231_v14  ;;  %v386_v20 = vpop.f32.mrb[1].mxu1 }
 0x1dc   :  { %v387_v22 = vadd.f32 %v386_v20, %v226_v15 }
 0x1dd   :  { %v446_v25 = vmul.f32 0.35355338, %v392_v19 }
 0x1de   :  { %v445_v23 = vmul.f32 0.35355338, %v387_v22  ;;  %v1762_v24 = vpop.f32.mrb[2].mxu1 }
 0x1df   :  { %v402_v27 = vadd.f32 %v1762_v24, %v241_v16  ;;  %v396_v28 = vpop.f32.mrb[3].mxu1 }
 0x1e0   :  { %v397_v30 = vadd.f32 %v396_v28, %v236_v18  ;;  %1808 = vmatprep.mubr.msk.f32.mxu1 %vm631_vm2, %v445_v23 }
 0x1e1   :  { %1809 = vmatmul.mubr.msk.f32.vlgmr.msra.gmra.mrb[20].mxu1 %vm631_vm2, %v446_v25  ;;  %v448_v35 = vmul.f32 0.35355338, %v402_v27 }
 0x1e2   :  { %v447_v33 = vmul.f32 0.35355338, %v397_v30  ;;  %v1765_v34 = vpop.f32.mrb[4].mxu1  ;;  %v866_v30 = vsub.s32 1, %v2340_v3 }
 0x1e3   :  { %v412_v37 = vadd.f32 %v1765_v34, %v251_v29  ;;  %v406_v38 = vpop.f32.mrb[5].mxu1  ;;  %v859_v34 = vsub.s32 0, %v2340_v3 }
 0x1e4   :  { %v407_v39 = vadd.f32 %v406_v38, %v246_v32  ;;  %1811 = vmatprep.mubr.msk.f32.mxu1 %vm631_vm2, %v447_v33  ;;  %v2079_v38 = vmov 1983009808  }
 0x1e5   :  { %v555_v40 = vmul.f32 %v446_v25, %v412_v37  ;;  %1812 = vmatmul.mubr.msk.f32.gmra.mrb[22].mxu1 %vm631_vm2, %v448_v35 }
 0x1e6   :  { %v554_v43 = vmul.f32 %v445_v23, %v407_v39  ;;  %v1768_v44 = vpop.f32.mrb[6].mxu1  ;;  %1822 = vmatprep.mubr.msk.f32.mxu1 %vm2076_vm5, %v2077_v9  ;;  %v811_v39 = vunpack.c.l.s4 %v2079_v38  ;;  %v73_v38 = vld [vmem:[%s2514_s5 + $0x88] sm:$0xff] }
 0x1e7   :  { %v422_v46 = vadd.f32 %v1768_v44, %v261_v42  ;;  %v416_v47 = vpop.f32.mrb[7].mxu1 }
 0x1e8   :  { %v1984_v48 = vpack.c.bf16 %v555_v40, %v554_v43  ;;  %v417_v49 = vadd.f32 %v416_v47, %v256_v45  ;;  %v812_v40 = vunpack.c.0.s8 %v811_v39  ;;  %v911_v39 = vsub.s32 %v2343_v7, %v2340_v3 }
 0x1e9   :  { %v557_v50 = vmul.f32 %v448_v35, %v422_v46 }
 0x1ea   :  { %v556_v51 = vmul.f32 %v447_v33, %v417_v49  ;;  %1985 = vmatpush3.bf16.msra.mxu0 %v1984_v48  ;;  %v2323_v52 = vpop.f32.mrb[8].mxu1  ;;  %v815_v44 = vsub.s32 %v812_v40, %v2340_v3 }
 0x1eb   :  { %1986 = vmatprep.subr.bf16.mxu0 %v2075_v13  ;;  %v2326_v53 = vpop.f32.mrb[9].mxu1 }
 0x1ec   :  { %v1987_v54 = vpack.c.bf16 %v557_v50, %v556_v51 }
 0x1ee   :  { %1988 = vmatpush3.bf16.msra.mxu0 %v1987_v54  ;;  %v2328_v55 = vpop.f32.mrb[10].mxu1 }
 0x1ef   :  { %v2330_v56 = vpop.f32.mrb[11].mxu1  ;;  %1825 = vmatprep.subr.mxu0 %v2077_v9 }
 0x1f1   :  { %1804 = vmatmul.mubr.msk.f32.vlgmr.msra.gmra.mrb[4].mxu0 %vm283_vm0, %v1543_v11 }
 0x1f2   :  { %v1785_v57 = vpop.f32.mrb[12].mxu1  ;;  %1826 = vmatpush3.msk.msra.mxu0 %vm644_vm1, %v2272_v2  ;;  %1827 = vmatprep.mubr.msk.f32.mxu0 %vm2076_vm5, %v2077_v9 }
 0x1f3   :  { %v515_v58 = vpop.f32.mrb[13].mxu1  ;;  %1865 = vmatprep.subr.mxu0 %v2077_v9  ;;  %v521_v12 = vadd.f32 %v1785_v57, %v251_v29 }
 0x1f4   :  { %v516_v14 = vadd.f32 %v515_v58, %v246_v32 }
 0x1f6   :  { %v1788_v59 = vpop.f32.mrb[14].mxu1 }
 0x1f7   :  { %v525_v60 = vpop.f32.mrb[15].mxu1  ;;  %v531_v19 = vadd.f32 %v1788_v59, %v261_v42  ;;  %v2080_v42 = vmov 1934713408  }
 0x1f8   :  { %v526_v20 = vadd.f32 %v525_v60, %v256_v45  ;;  %v828_v43 = vunpack.c.l.s4 %v2080_v42 }
 0x1fa   :  { %v2332_v61 = vpop.f32.mrb[16].mxu1  ;;  %v829_v45 = vunpack.c.0.s8 %v828_v43 }
 0x1fb   :  { %v2334_v62 = vpop.f32.mrb[17].mxu1 }
 0x1fc   :  { %v832_v49 = vsub.s32 %v829_v45, %v2340_v3 }
 0x1fe   :  { %v2336_v63 = vpop.f32.mrb[18].mxu1 }
 0x1ff   :  { %v2338_v0 = vpop.f32.mrb[19].mxu1 }
 0x2b4   :  { %v1810_v15 = vpop.f32.mrb[20].mxu1 }
 0x2b5   :  { %v734_v16 = vmul.f32 %v1810_v15, %v521_v12  ;;  %v714_v17 = vpop.f32.mrb[21].mxu1 }
 0x2b6   :  { %v733_v18 = vmul.f32 %v714_v17, %v516_v14  ;;  %v880_v14 = vsub.s32 3, %v2340_v3 }
 0x2b8   :  { %v1990_v22 = vpack.c.bf16 %v734_v16, %v733_v18  ;;  %v1813_v23 = vpop.f32.mrb[22].mxu1 }
 0x2b9   :  { %v736_v24 = vmul.f32 %v1813_v23, %v531_v19  ;;  %v724_v25 = vpop.f32.mrb[23].mxu1 }
 0x2ba   :  { %v735_v27 = vmul.f32 %v724_v25, %v526_v20  ;;  %1991 = vmatpush3.bf16.msra.mxu1 %v1990_v22 }
 0x2bb   :  { %1992 = vmatprep.subr.bf16.mxu1 %v2075_v13 }
 0x2bc   :  { %v1993_v28 = vpack.c.bf16 %v736_v24, %v735_v27 }
 0x2be   :  { %1994 = vmatpush3.bf16.msra.mxu1 %v1993_v28 }
 0x2bf   :  { %1995 = vmatprep.subr.bf16.mxu1 %v2075_v13 }
 0x2c1   :  { %1823 = vmatmul.mubr.msk.f32.vlgmr.msra.gmra.mrb[24].mxu1 %vm283_vm0, %v1543_v11  ;;  %v873_v11 = vsub.s32 2, %v2340_v3 }
 0x2c2   :  { %1997 = vmatpush3.bf16.msra.mxu1 %v2125_v4  ;;  %1862 = vmatprep.mubr.msk.f32.mxu1 %vm2076_vm5, %v2077_v9 }
 0x2c3   :  { %1998 = vmatprep.subr.bf16.mxu1 %v2075_v13 }
 0x2c4   :  { %v2379_v29 = vpop.f32.mrb[4].mxu0 }
 0x2c5   :  { %v1805_v32 = vpop.f32.mrb[5].mxu0  ;;  %v867_v33 = vrot.slane %v2379_v29, %v866_v30  ;;  %v874_v12 = vrot.slane %v2379_v29, %v873_v11  ;;  %v881_v15 = vrot.slane %v2379_v29, %v880_v14 }
 0x2c6   :  { %2000 = vmatpush3.bf16.msra.mxu1 %v2130_v6  ;;  %v68_v32 = vld [vmem:[%s2514_s5 + $0x60] sm:$0xff] }
 0x2c7   :  { %2001 = vmatprep.subr.bf16.mxu1 %v2075_v13  ;;  %869 = vbcast.lane.b32.xlu1 %v867_v33, 256  ;;  %v69_v33 = vld [vmem:[%s2514_s5 + $0x68] sm:$0xff] }
 0x2ca   :  { %2003 = vmatpush3.bf16.msra.mxu1 %v2144_v10 }
 0x2cb   :  { %2004 = vmatprep.subr.bf16.mxu1 %v2075_v13 }
 0x2ce   :  { %2006 = vmatpush3.bf16.msra.mxu1 %v2176_v21 }
 0x2cf   :  { %2007 = vmatprep.subr.bf16.mxu1 %v2075_v13 }
 0x2d2   :  { %2009 = vmatpush3.bf16.msra.mxu1 %v2192_v26 }
 0x2d3   :  { %2010 = vmatprep.subr.bf16.mxu1 %v2075_v13 }
 0x2d6   :  { %2012 = vmatpush3.bf16.msra.mxu1 %v2208_v31 }
 0x2d7   :  { %2013 = vmatprep.subr.bf16.mxu1 %v2075_v13 }
 0x2da   :  { %2015 = vmatpush3.bf16.msra.mxu1 %v2224_v36 }
 0x2db   :  { %2016 = vmatprep.subr.bf16.mxu1 %v2075_v13  ;;  %v860_v13 = vrot.slane %v2379_v29, %v859_v34  ;;  %v70_v34 = vld [vmem:[%s2514_s5 + $0x70] sm:$0xff] }
 0x2de   :  { %2018 = vmatpush3.bf16.msra.mxu1 %v2240_v41 }
 0x339   :  { %v870_v16 = vpop.permute.xlu1 %869 }
 0x394   :  { %v2384_v35 = vpop.f32.mrb[24].mxu1 }
 0x395   :  { %808 = vrot.lane.b32.xlu0 %v2384_v35, %s2078_s3  ;;  %v1824_v37 = vpop.f32.mrb[25].mxu1  ;;  %v816_v47 = vrot.slane %v2384_v35, %v815_v44 }
 0x396   :  { %v71_v37 = vld [vmem:[%s2514_s5 + $0x78] sm:$0xff] }
 0x399   :  { %862 = vbcast.lane.b32.xlu0 %v860_v13, 256  ;;  %v72_v13 = vld [vmem:[%s2514_s5 + $0x80] sm:$0xff] }
 0x407   :  { %v809_v46 = vpop.permute.xlu0 %808 }
 0x408   :  { %v824_v48 = vrot.slane %v809_v46, %v815_v44 }
 0x40a   :  { %v825_v50 = vcombine.low %v816_v47, %v824_v48  ;;  %v826_v51 = vcombine.high %v816_v47, %v824_v48 }
 0x40b   :  { %v863_v17 = vpop.permute.xlu0 %862 }
 0x40c   :  { %v833_v54 = vrot.slane %v825_v50, %v832_v49  ;;  %v840_v57 = vrot.slane %v826_v51, %v832_v49 }
 0x40e   :  { %v844_v58 = vsel %vm843_vm7, %v833_v54, -inf  ;;  %v850_v59 = vsel %vm843_vm7, %v840_v57, -inf  ;;  %v842_v60 = vcombine.high %v840_v57, %v2077_v9  ;;  %v841_v1 = vcombine.high %v833_v54, %v2077_v9 }
 0x40f   :  { %845 = vmax.xlane.f32.xlu1 %v844_v58  ;;  %851 = vmax.xlane.f32.xlu0 %v850_v59 }
 0x410   :  { %v853_v5 = vsel %vm843_vm7, %v842_v60, -inf  ;;  %v847_v8 = vsel %vm843_vm7, %v841_v1, -inf }
 0x413   :  { %854 = vmax.xlane.f32.xlu1 %v853_v5  ;;  %848 = vmax.xlane.f32.xlu0 %v847_v8 }
 0x424   :  { %876 = vbcast.lane.b32.xlu1 %v874_v12, 256 }
 0x429   :  { %883 = vbcast.lane.b32.xlu0 %v881_v15, 256  ;;  %v88_v15 = vmul.u32 8, %v2343_v7 }
 0x42b   :  { %vm89_vm11 = vcmp.ge.s32.totalorder %v2340_v3, %v88_v15 }
 0x49c   :  { %v846_v18 = vpop.xlane.xlu1 %845  ;;  %v852_v19 = vpop.xlane.xlu0 %851 }
 0x49d   :  { %v889_v20 = vmax.f32 %v846_v18, %v863_v17 }
 0x49f   :  { %898 = vperm.xlu1 %2067, %v889_v20   ;;  %v87_v20 = vadd.s32 24, %v2340_v3 }
 0x4a0   :  { %v855_v22 = vpop.xlane.xlu1 %854  ;;  %v849_v23 = vpop.xlane.xlu0 %848 }
 0x4a1   :  { %v890_v24 = vmax.f32 %v849_v23, %v870_v16 }
 0x4a3   :  { %901 = vperm.xlu0 %2066, %v890_v24  }
 0x4a4   :  { %v877_v25 = vpop.permute.xlu1 %876  ;;  %v884_v27 = vpop.permute.xlu0 %883 }
 0x4a5   :  { %v891_v28 = vmax.f32 %v852_v19, %v877_v25  ;;  %v892_v30 = vmax.f32 %v855_v22, %v884_v27  ;;  %v93_v19 = vadd.s32 8, %v88_v15 }
 0x4a7   :  { %904 = vperm.xlu1 %2067, %v891_v28   ;;  %907 = vperm.xlu0 %2066, %v892_v30   ;;  %vm94_vm12 = vcmp.lt.s32.totalorder %v2340_v3, %v93_v19 }
 0x4a8   :  { %vm98_vm13 = vmand %vm89_vm11, %vm94_vm12 }
 0x4a9   :  { %v1544_v7 = vsel %vm98_vm13, 1.0, %v2077_v9 }
 0x4ab   :  { %265 = vperm.xlu1 %2067, %v68_v32   ;;  %270 = vperm.xlu0 %2066, %v69_v33  }
 0x4af   :  { %275 = vperm.xlu1 %2067, %v70_v34   ;;  %280 = vperm.xlu0 %2066, %v71_v37  }
 0x4b3   :  { %1448 = vperm.xlu1 %2067, %v72_v13   ;;  %1453 = vperm.xlu0 %2066, %v73_v38  }
 0x51e   :  { %v899_v40 = vpop.permute.xlu1 %898 }
 0x51f   :  { %v912_v44 = vrot.slane %v899_v40, %v911_v39 }
 0x522   :  { %v902_v42 = vpop.permute.xlu0 %901 }
 0x523   :  { %v916_v43 = vrot.slane %v902_v42, %v911_v39 }
 0x525   :  { %v926_v49 = vsel %vm925_vm8, %v916_v43, %v912_v44  ;;  %vm92_vm8 = vcmp.ge.s32.totalorder %v87_v20, %v88_v15 }
 0x526   :  { %v905_v45 = vpop.permute.xlu1 %904  ;;  %v908_v46 = vpop.permute.xlu0 %907 }
 0x527   :  { %v920_v47 = vrot.slane %v905_v45, %v911_v39  ;;  %v924_v48 = vrot.slane %v908_v46, %v911_v39 }
 0x529   :  { %v928_v50 = vsel %vm927_vm9, %v920_v47, %v926_v49  ;;  %vm97_vm9 = vcmp.lt.s32.totalorder %v87_v20, %v93_v19 }
 0x52a   :  { %v930_v51 = vsel %vm929_vm10, %v924_v48, %v928_v50  ;;  %v2417_v54 = vpop.permute.xlu1 %265  ;;  %v2419_v57 = vpop.permute.xlu0 %270  ;;  %vm101_vm10 = vmand %vm92_vm8, %vm97_vm9 }
 0x52b   :  { %v932_v58 = vsub.f32 %v2379_v29, %v930_v51  ;;  %v2424_v59 = vadd.f32 %v2326_v53, %v2417_v54  ;;  %v432_v60 = vadd.f32 %v2323_v52, %v2419_v57  ;;  %1828 = vmatmul.mubr.msk.f32.vlgmr.msra.gmra.mrb[6].mxu0 %vm631_vm2, %v930_v51  ;;  %v1547_v25 = vsel %vm101_vm10, 1.0, %v2077_v9 }
 0x52c   :  { %1866 = vmatpush3.msk.msra.mxu0 %vm644_vm1, %v2272_v2  ;;  %1867 = vmatprep.mubr.msk.f32.mxu0 %vm2076_vm5, %v2077_v9 }
 0x52d   :  { %v933_v14 = vmul.f32 1.442695, %v932_v58 }
 0x52e   :  { %v2433_v1 = vpop.permute.xlu1 %275  ;;  %v2435_v5 = vpop.permute.xlu0 %280 }
 0x52f   :  { %v2439_v29 = vadd.f32 %v2330_v56, %v2433_v1  ;;  %v2443_v53 = vadd.f32 %v2328_v55, %v2435_v5  ;;  %v85_v55 = vadd.s32 8, %v2340_v3 }
 0x531   :  { %vm90_vm14 = vcmp.ge.s32.totalorder %v85_v55, %v88_v15  ;;  %vm95_vm15 = vcmp.lt.s32.totalorder %v85_v55, %v93_v19 }
 0x532   :  { %vm99_vm5 = vmand %vm90_vm14, %vm95_vm15 }
 0x533   :  { %v1545_v24 = vsel %vm99_vm5, 1.0, %v2077_v9 }
 0x5fe   :  { %v1003_v52 = vpop.f32.mrb[6].mxu0 }
 0x5ff   :  { %v1007_v8 = vsub.f32 %v2384_v35, %v1003_v52  ;;  %v1829_v11 = vpop.f32.mrb[7].mxu0  ;;  %v86_v35 = vadd.s32 16, %v2340_v3 }
 0x601   :  { %v1008_v2 = vmul.f32 1.442695, %v1007_v8  ;;  %vm91_vm1 = vcmp.ge.s32.totalorder %v86_v35, %v88_v15  ;;  %vm96_vm3 = vcmp.lt.s32.totalorder %v86_v35, %v93_v19 }
 0x602   :  { %vm100_vm7 = vmand %vm91_vm1, %vm96_vm3 }
 0x603   :  { %2068 = vpow2.f32 %v1008_v2  ;;  %v1546_v3 = vsel %vm100_vm7, 1.0, %v2077_v9 }
 0x604   :  { %2070 = vpow2.f32 %v933_v14 }
 0x60d   :  { %v2069_v12 = vpop.eup %2068 }
 0x60e   :  { %1863 = vmatmul.mubr.f32.vlgmr.msra.gmra.mrb[26].mxu1 %v2069_v12  ;;  %v2071_v16 = vpop.eup %2070 }
 0x6e1   :  { %v1076_v17 = vpop.f32.mrb[26].mxu1 }
 0x6e2   :  { %v1080_v56 = vadd.f32 %v2071_v16, %v1076_v17  ;;  %v1864_v18 = vpop.f32.mrb[27].mxu1 }
 0x6e4   :  { %2072 = vrcp.f32 %v1080_v56 }
 0x6ee   :  { %v2073_v22 = vpop.eup %2072 }
 0x6ef   :  { %1868 = vmatmul.mubr.msk.f32.vlgmr.msra.gmra.mrb[8].mxu0 %vm631_vm2, %v2073_v22  ;;  %v1082_v23 = vmul.f32 %v2073_v22, %v2071_v16 }
 0x6f0   :  { %1872 = vmatprep.mubr.msk.f32.mxu0 %vm1157_vm4, %v1544_v7 }
 0x6f1   :  { %1870 = vmatprep.subr.msk.mxu0 %vm1170_vm6, %v1082_v23 }
 0x6f2   :  { %1871 = vmatpush3.msk.msra.mxu0 %vm1170_vm6, %v1082_v23 }
 0x6f3   :  { %1873 = vmatmul.mubr.msk.f32.vlgmr.msra.gmra.mrb[10].mxu0 %vm1157_vm4, %v1545_v24 }
 0x6f4   :  { %1875 = vmatprep.mubr.msk.f32.mxu0 %vm1157_vm4, %v1546_v3 }
 0x6f7   :  { %1876 = vmatmul.mubr.msk.f32.gmra.mrb[12].mxu0 %vm1157_vm4, %v1547_v25 }
 0x6f8   :  { %1880 = vmatprep.mubr.msk.f32.mxu0 %vm1157_vm4, %v1544_v7 }
 0x7c2   :  { %v1152_v27 = vpop.f32.mrb[8].mxu0 }
 0x7c3   :  { %v1156_v28 = vmul.f32 %v2069_v12, %v1152_v27  ;;  %v1869_v30 = vpop.f32.mrb[9].mxu0 }
 0x7c5   :  { %1878 = vmatprep.subr.msk.mxu0 %vm1170_vm6, %v1156_v28 }
 0x7c6   :  { %v1874_v32 = vpop.f32.mrb[10].mxu0  ;;  %1879 = vmatpush3.msk.msra.mxu0 %vm1170_vm6, %v1156_v28 }
 0x7c7   :  { %v1348_v33 = vmul.f32 %v1874_v32, %v432_v60  ;;  %v1240_v34 = vpop.f32.mrb[11].mxu0  ;;  %1881 = vmatmul.mubr.msk.f32.vlgmr.msra.gmra.mrb[14].mxu0 %vm1157_vm4, %v1545_v24  ;;  %2020 = vmatprep.subr.bf16.mxu0 %v2125_v4 }
 0x7c8   :  { %v1347_v9 = vmul.f32 %v1240_v34, %v2424_v59  ;;  %1883 = vmatprep.mubr.msk.f32.mxu0 %vm1157_vm4, %v1546_v3  ;;  %2022 = vmatpush3.bf16.msra.mxu0 %v2125_v4  ;;  %v541_v4 = vadd.f32 %v2332_v61, %v2419_v57  ;;  %v1444_v61 = vld [vmem:[%s2517_s4] sm:$0xff]  ;;  %v1454_v57 = vpop.permute.xlu0 %1453  ;;  %v1449_v59 = vpop.permute.xlu1 %1448 }
 0x7c9   :  { %2024 = vmatprep.subr.bf16.mxu0 %v2130_v6  ;;  %1932 = vmatprep.mubr.msk.f32.mxu1 %vm283_vm0, %v1444_v61 }
 0x7ca   :  { %v1877_v37 = vpop.f32.mrb[12].mxu0 }
 0x7cb   :  { %v1350_v13 = vmul.f32 %v1877_v37, %v2443_v53  ;;  %v1250_v38 = vpop.f32.mrb[13].mxu0  ;;  %1884 = vmatmul.mubr.msk.f32.gmra.mrb[16].mxu0 %vm1157_vm4, %v1547_v25 }
 0x7cc   :  { %v1349_v39 = vmul.f32 %v1250_v38, %v2439_v29  ;;  %2026 = vmatpush3.bf16.msra.mxu0 %v2130_v6  ;;  %v536_v6 = vadd.f32 %v2334_v62, %v2417_v54  ;;  %v1445_v54 = vld [vmem:[%s2517_s4 + $0x8] sm:$0xff] }
 0x7cd   :  { %2028 = vmatprep.subr.bf16.mxu0 %v2144_v10 }
 0x7d0   :  { %2030 = vmatpush3.bf16.msra.mxu0 %v2144_v10 }
 0x7d1   :  { %2032 = vmatprep.subr.bf16.mxu0 %v2176_v21 }
 0x7d4   :  { %2034 = vmatpush3.bf16.msra.mxu0 %v2176_v21 }
 0x7d5   :  { %2036 = vmatprep.subr.bf16.mxu0 %v2192_v26 }
 0x7d8   :  { %2038 = vmatpush3.bf16.msra.mxu0 %v2192_v26 }
 0x7d9   :  { %2040 = vmatprep.subr.bf16.mxu0 %v2208_v31 }
 0x7dc   :  { %2042 = vmatpush3.bf16.msra.mxu0 %v2208_v31  ;;  %v551_v31 = vadd.f32 %v2336_v63, %v2435_v5 }
 0x7dd   :  { %2044 = vmatprep.subr.bf16.mxu0 %v2224_v36 }
 0x7e0   :  { %2046 = vmatpush3.bf16.msra.mxu0 %v2224_v36  ;;  %v546_v36 = vadd.f32 %v2338_v0, %v2433_v1 }
 0x7e1   :  { %2048 = vmatprep.subr.bf16.mxu0 %v2240_v41 }
 0x7e4   :  { %2050 = vmatpush3.bf16.msra.mxu0 %v2240_v41 }
 0x89a   :  { %v1882_v10 = vpop.f32.mrb[14].mxu0 }
 0x89b   :  { %v1352_v21 = vmul.f32 %v1882_v10, %v541_v4  ;;  %v1328_v26 = vpop.f32.mrb[15].mxu0 }
 0x89c   :  { %v1351_v40 = vmul.f32 %v1328_v26, %v536_v6 }
 0x89e   :  { %v1885_v42 = vpop.f32.mrb[16].mxu0  ;;  %1918 = vmatprep.mubr.f32.mxu0 %v1351_v40 }
 0x89f   :  { %v1354_v43 = vmul.f32 %v1885_v42, %v551_v31  ;;  %v1338_v41 = vpop.f32.mrb[17].mxu0  ;;  %1919 = vmatmul.mubr.f32.vlgmr.msra.gmra.mrb[18].mxu0 %v1352_v21 }
 0x8a0   :  { %v1353_v44 = vmul.f32 %v1338_v41, %v546_v36 }
 0x8a2   :  { %1921 = vmatprep.mubr.f32.mxu0 %v1353_v44 }
 0x8a3   :  { %1922 = vmatmul.mubr.f32.gmra.mrb[20].mxu0 %v1354_v43 }
 0x972   :  { %v1920_v62 = vpop.f32.mrb[18].mxu0 }
 0x973   :  { %v1441_v45 = vadd.f32 %v1920_v62, %v1348_v33  ;;  %v1421_v63 = vpop.f32.mrb[19].mxu0 }
 0x974   :  { %v1440_v46 = vadd.f32 %v1421_v63, %v1347_v9 }
 0x976   :  { %v2051_v47 = vpack.c.bf16 %v1441_v45, %v1440_v46  ;;  %v1923_v0 = vpop.f32.mrb[20].mxu0 }
 0x977   :  { %v1443_v48 = vadd.f32 %v1923_v0, %v1350_v13  ;;  %v1431_v49 = vpop.f32.mrb[21].mxu0 }
 0x978   :  { %v1442_v50 = vadd.f32 %v1431_v49, %v1349_v39  ;;  %2052 = vmatprep.subr.bf16.mxu1 %v2051_v47 }
 0x979   :  { %2054 = vmatpush3.bf16.msra.mxu1 %v2051_v47 }
 0x97a   :  { %v2055_v51 = vpack.c.bf16 %v1443_v48, %v1442_v50 }
 0x97c   :  { %2056 = vmatprep.subr.bf16.mxu1 %v2055_v51 }
 0x97d   :  { %2058 = vmatpush3.bf16.msra.mxu1 %v2055_v51 }
 0x980   :  { %1933 = vmatmul.mubr.msk.f32.vlgmr.msra.gmra.mrb[28].mxu1 %vm283_vm0, %v1445_v54 }
 0xa53   :  { %v1934_v58 = vpop.f32.mrb[28].mxu1 }
 0xa54   :  { %v1534_v60 = vadd.f32 %v1934_v58, %v1454_v57  ;;  %v1528_v1 = vpop.f32.mrb[29].mxu1 }
 0xa55   :  { %v1529_v5 = vadd.f32 %v1528_v1, %v1449_v59 }
 0xa56   :  { %1538 = vst.msk [vmem:[%s2518_s6 + $0x8] sm:$0xff] %vm631_vm2, %v1534_v60 }
 0xa57   :  { %1537 = vst.msk [vmem:[%s2518_s6] sm:$0xff] %vm631_vm2, %v1529_v5 }

</bundles_post_ra>
